<compile_context>
chip_gen: v6e
topology: v6e:2x2x1
jax: 0.10.0
libtpu: 0.0.40
codegen_flags: <defaults>
</compile_context>

<pallas_src>
import functools

import jax
import jax.numpy as jnp
from jax.experimental import pallas as pl
from jax.experimental.pallas import tpu as pltpu


def _feature_selector_kernel(gate_ref, x_ref, o_ref):
    # gate_ref: (1, TILE_L) f32; x_ref / o_ref: (TILE_B, TILE_L) in x.dtype.
    # TODO(synk): torch type promotion (bf16 x * f32 gate) would return f32; we keep
    # the output in x.dtype (exact for f32 inputs) to halve write bandwidth.
    o_ref[...] = x_ref[...] * gate_ref[...].astype(o_ref.dtype)


def _largest_divisor_tile(full, align, target):
    """Largest multiple of `align` that divides `full`, capped at `target`.
    Falls back to the full extent (allowed by the full-dim exception of (8,128))."""
    if full % align != 0 or full < align:
        return full
    best = align
    cap = min(full, max(int(target), align))
    t = align
    while t <= cap:
        if full % t == 0:
            best = t
        t += align
    return best


def _vmem_capacity_bytes(default=64 << 20):
    """Physical per-TC VMEM, queried at trace time (fallback = v7x's 64 MiB)."""
    try:
        info = pltpu.get_tpu_info()
        cap = getattr(info, "vmem_capacity_bytes", None)
        if cap:
            return int(cap)
    except Exception:
        pass
    return default


def feature_selector_forward(x, mu, noise, *, sigma, training, donate_x=False,
                             tile_rows=None, tile_lanes=None):
    """x: (B, D, T); mu, noise: (D,).

    Returns x * hard_sigmoid(mu + sigma * noise * training) broadcast over axis 1.
    For torch parity (self.noise.normal_() each forward), pass freshly sampled
    `noise` per call when training=True.  donate_x=True aliases x's (reshaped)
    buffer into the output — only use when the caller can release x.
    """
    B, D, T = x.shape
    L = D * T
    dtype = x.dtype
    itemsize = jnp.dtype(dtype).itemsize
    sub_align = {4: 8, 2: 16, 1: 32}.get(itemsize, 8)

    # --- gate: O(D) wrapper work, f32 math (matches torch hard_sigmoid) ---------
    # TODO(synk): `training`/`sigma` are trace-time constants; a runtime-dynamic
    # training flag would need an SMEM scalar input and a retrace-free path.
    train = jnp.float32(1.0 if training else 0.0)
    z = mu.astype(jnp.float32) + (jnp.float32(sigma) * train) * noise.astype(jnp.float32)
    gate = jnp.clip(z + jnp.float32(0.5), 0.0, 1.0)            # (D,)
    gate_l = jnp.repeat(gate, T)                                # (L,) per batch row

    # --- lane-density: fold a batch factor into the lane axis ------------------
    k = 1
    if L % 128 != 0:
        for cand in range(1, B + 1):
            if B % cand == 0 and (cand * L) % 128 == 0:
                k = cand
                break
    rows, lanes = B // k, k * L
    x2 = x.reshape(rows, lanes)
    gate_row = jnp.tile(gate_l, k).reshape(1, lanes).astype(jnp.float32)

    # Pad lanes to a multiple of 128 if no fold achieved it (odd B, small L, ...).
    lanes_p = lanes
    if lanes % 128 != 0:
        lanes_p = ((lanes + 127) // 128) * 128
        x2 = jnp.pad(x2, ((0, 0), (0, lanes_p - lanes)))
        gate_row = jnp.pad(gate_row, ((0, 0), (0, lanes_p - lanes)))

    # --- VMEM-derived tile budget (generation-aware) ----------------------------
    phys_vmem = _vmem_capacity_bytes()
    vmem_limit = int(min((phys_vmem * 3) // 4, 64 << 20))        # 48 MiB on v7x, 64 MiB on v5e/v6e
    tile_budget = max(1 << 20, min(vmem_limit // 4 - (1 << 20), 12 << 20))
    budget_elems = tile_budget // itemsize

    # Pad batch rows only when a full-extent rows tile would not fit the budget
    # (robustness for large, non-8-multiple B); small unaligned rows use the
    # full-dim exception with no padding.
    rows_p = rows
    if rows % sub_align != 0 and rows * lanes_p > budget_elems:
        rows_p = ((rows + sub_align - 1) // sub_align) * sub_align
        x2 = jnp.pad(x2, ((0, rows_p - rows), (0, 0)))

    # --- tile selection ----------------------------------------------------------
    if tile_rows is not None and tile_lanes is not None:
        tile_b, tile_l = int(tile_rows), int(tile_lanes)
    elif rows_p % sub_align != 0:
        # Small unaligned batch: single full-rows tile (whole array fits the budget).
        tile_b = rows_p
        tile_l = _largest_divisor_tile(lanes_p, 128, max(128, budget_elems // max(tile_b, 1)))
    elif lanes_p * sub_align <= budget_elems:
        # Full-lane tiles: each x/out block is one fully contiguous HBM slab.
        tile_l = lanes_p
        tile_b = _largest_divisor_tile(rows_p, sub_align, budget_elems // lanes_p)
        # Keep >= 2 grid steps when the shape allows so both v7x TCs get work.
        if rows_p // tile_b < 2 and rows_p >= 2 * sub_align:
            tile_b = _largest_divisor_tile(rows_p, sub_align, rows_p // 2)
    else:
        tile_b = _largest_divisor_tile(rows_p, sub_align, 512)
        tile_l = _largest_divisor_tile(lanes_p, 128, max(128, budget_elems // max(tile_b, 1)))

    # Lane tiles outer so the (tiny) gate block stays resident across batch steps.
    grid = (lanes_p // tile_l, rows_p // tile_b)

    out2 = pl.pallas_call(
        _feature_selector_kernel,
        out_shape=jax.ShapeDtypeStruct((rows_p, lanes_p), dtype),
        grid=grid,
        in_specs=[
            pl.BlockSpec((1, tile_l), lambda li, bi: (0, li)),         # gate
            pl.BlockSpec((tile_b, tile_l), lambda li, bi: (bi, li)),   # x
        ],
        out_specs=pl.BlockSpec((tile_b, tile_l), lambda li, bi: (bi, li)),
        compiler_params=pltpu.CompilerParams(
            dimension_semantics=("parallel", "parallel"),
            vmem_limit_bytes=vmem_limit),
        cost_estimate=pl.CostEstimate(
            flops=rows_p * lanes_p,
            transcendentals=0,
            bytes_accessed=2 * rows_p * lanes_p * itemsize + lanes_p * 4),
        input_output_aliases=({1: 0} if donate_x else {}),
    )(gate_row, x2)

    out2 = out2[:rows, :lanes]
    return out2.reshape(B, D, T)


def feature_selector_ref(x, mu, noise, *, sigma, training):
    z = mu + sigma * noise * (1.0 if training else 0.0)
    gate = jnp.clip(z + 0.5, 0.0, 1.0)
    return x * gate[None, :, None]


if __name__ == "__main__":
    key = jax.random.PRNGKey(0)
    ks = jax.random.split(key, 12)
    sigma = 0.5

    # 1) Primary module shape: (batch=2, input_dim=4, seq=16) -> batch-fold (k=2) path.
    B, D, T = 2, 4, 16
    x = jax.random.normal(ks[0], (B, D, T), dtype=jnp.float32)
    mu = 0.01 * jax.random.normal(ks[1], (D,), dtype=jnp.float32)
    noise = jax.random.normal(ks[2], (D,), dtype=jnp.float32)   # fresh draw per fwd (training)
    out = jax.block_until_ready(
        feature_selector_forward(x, mu, noise, sigma=sigma, training=True))
    ref = feature_selector_ref(x, mu, noise, sigma=sigma, training=True)
    assert out.shape == (B, D, T)
    assert jnp.allclose(out, ref, atol=1e-6, rtol=1e-6), "mismatch (primary)"

    # 2) Eval mode: noise term gated off.
    out_eval = jax.block_until_ready(
        feature_selector_forward(x, mu, noise, sigma=sigma, training=False))
    ref_eval = feature_selector_ref(x, mu, noise, sigma=sigma, training=False)
    assert jnp.allclose(out_eval, ref_eval, atol=1e-6, rtol=1e-6), "mismatch (eval)"

    # 3) Lane-dense shape: full-lane contiguous slab path; also exercise donation under jit.
    B2, D2, T2 = 8, 16, 128
    x2 = jax.random.normal(ks[3], (B2, D2, T2), dtype=jnp.float32)
    mu2 = 0.01 * jax.random.normal(ks[4], (D2,), dtype=jnp.float32)
    noise2 = jax.random.normal(ks[5], (D2,), dtype=jnp.float32)
    out2 = jax.block_until_ready(
        feature_selector_forward(x2, mu2, noise2, sigma=sigma, training=True))
    ref2 = feature_selector_ref(x2, mu2, noise2, sigma=sigma, training=True)
    assert jnp.allclose(out2, ref2, atol=1e-6, rtol=1e-6), "mismatch (lane-dense)"
    fwd_donate = jax.jit(functools.partial(
        feature_selector_forward, sigma=sigma, training=True, donate_x=True))
    out2d = jax.block_until_ready(fwd_donate(x2, mu2, noise2))
    assert jnp.allclose(out2d, ref2, atol=1e-6, rtol=1e-6), "mismatch (donated)"

    # 4) Forced multi-tile grid (4 lane tiles x 2 batch tiles) to validate index maps.
    B3, D3, T3 = 16, 8, 128
    x3 = jax.random.normal(ks[6], (B3, D3, T3), dtype=jnp.float32)
    mu3 = 0.01 * jax.random.normal(ks[7], (D3,), dtype=jnp.float32)
    noise3 = jax.random.normal(ks[8], (D3,), dtype=jnp.float32)
    out3 = jax.block_until_ready(
        feature_selector_forward(x3, mu3, noise3, sigma=sigma, training=True,
                                 tile_rows=8, tile_lanes=256))
    assert jnp.allclose(
        out3, feature_selector_ref(x3, mu3, noise3, sigma=sigma, training=True),
        atol=1e-6, rtol=1e-6), "mismatch (multi-tile)"

    # 5) Odd batch + tiny L: no batch fold possible -> lane zero-pad path.
    B4, D4, T4 = 3, 4, 16
    x4 = jax.random.normal(ks[9], (B4, D4, T4), dtype=jnp.float32)
    out4 = jax.block_until_ready(
        feature_selector_forward(x4, mu, noise, sigma=sigma, training=True))
    assert jnp.allclose(
        out4, feature_selector_ref(x4, mu, noise, sigma=sigma, training=True),
        atol=1e-6, rtol=1e-6), "mismatch (lane-pad)"

    # 6) bf16 input: 16-sublane alignment path; compare against f32 reference loosely.
    B5, D5, T5 = 32, 16, 64
    x5 = jax.random.normal(ks[10], (B5, D5, T5), dtype=jnp.float32).astype(jnp.bfloat16)
    mu5 = 0.01 * jax.random.normal(ks[11], (D5,), dtype=jnp.float32)
    noise5 = jax.random.normal(ks[2], (D5,), dtype=jnp.float32)
    out5 = jax.block_until_ready(
        feature_selector_forward(x5, mu5, noise5, sigma=sigma, training=True))
    ref5 = feature_selector_ref(x5.astype(jnp.float32), mu5, noise5, sigma=sigma, training=True)
    assert out5.dtype == jnp.bfloat16
    assert jnp.allclose(out5.astype(jnp.float32), ref5, atol=3e-2, rtol=3e-2), "mismatch (bf16)"

    print("KERNEL_OK")
</pallas_src>

<mosaic_0001>
module attributes {stable_mosaic.version = 11 : i64} {
  func.func @_feature_selector_kernel(%arg0: i32, %arg1: i32, %arg2: memref<1x128xf32, #tpu.memory_space<vmem>>, %arg3: memref<1x128xf32, #tpu.memory_space<vmem>>, %arg4: memref<1x128xf32, #tpu.memory_space<vmem>>) attributes {dimension_semantics = [#tpu.dimension_semantics<parallel>, #tpu.dimension_semantics<parallel>], iteration_bounds = array<i64: 1, 1>, scalar_prefetch = 0 : i64, scratch_operands = 0 : i64, tpu.core_type = #tpu.core_type<tc>, window_params = [{transform_indices = @transform_0, window_bounds = array<i64: 1, 128>}, {transform_indices = @transform_1, window_bounds = array<i64: 1, 128>}, {transform_indices = @transform_2, window_bounds = array<i64: 1, 128>}]} {
    %c0 = arith.constant 0 : index
    %c0_0 = arith.constant 0 : index
    %0 = vector.load %arg3[%c0, %c0_0] : memref<1x128xf32, #tpu.memory_space<vmem>>, vector<1x128xf32>
    %c0_1 = arith.constant 0 : index
    %c0_2 = arith.constant 0 : index
    %1 = vector.load %arg2[%c0_1, %c0_2] : memref<1x128xf32, #tpu.memory_space<vmem>>, vector<1x128xf32>
    %2 = arith.mulf %0, %1 : vector<1x128xf32>
    %c0_3 = arith.constant 0 : index
    %c0_4 = arith.constant 0 : index
    %3 = vector.load %arg4[%c0_3, %c0_4] : memref<1x128xf32, #tpu.memory_space<vmem>>, vector<1x128xf32>
    tpu.vector_store %arg4[%c0_3, %c0_4], %2 {strides = array<i32>} : memref<1x128xf32, #tpu.memory_space<vmem>>, vector<1x128xf32>,
    return
  }
  func.func @transform_0(%arg0: i32, %arg1: i32) -> (i32, i32) {
    %c0_i32 = arith.constant 0 : i32
    %c0_i32_0 = arith.constant 0 : i32
    return %c0_i32, %arg0 : i32, i32
  }
  func.func @transform_1(%arg0: i32, %arg1: i32) -> (i32, i32) {
    %c0_i32 = arith.constant 0 : i32
    return %arg1, %arg0 : i32, i32
  }
  func.func @transform_2(%arg0: i32, %arg1: i32) -> (i32, i32) {
    %c0_i32 = arith.constant 0 : i32
    return %arg1, %arg0 : i32, i32
  }
}

</mosaic_0001>

<bundles_post_ra>
// kernel: tpu_custom_call.1
= control target key start
LH: loop header
LB: loop body
LE: loop exit
PB: predicated region body
PF: predicated region fallthrough
CT: control target
= control target key end

     0   :  { %7 = vsyncpa [#allocation3], 0  ;;  %s115_s0 = inlined_call_operand.hbm [shape: f32[1,128], index: 0, kind: input, shape index: {}]   ;;  %s116_s1 = inlined_call_operand.vmem [shape: f32[1,128], index: 1, kind: input, shape index: {}]   ;;  %s117_s2 = inlined_call_operand.hbm [shape: f32[1,128], index: 2, kind: output, shape index: {}]  }
   0x1   :  { %8 = vsyncpa [#allocation4], 0  ;;  %s89_s9 = smov [#allocation2]  }
   0x2   :  { %s15_s10 = sshll.u32 %s89_s9, 4  ;;  %s16_s10 = int_to_ptr.vmem [resolvable:$true] %s15_s10 }
   0x3   :  { %s53_s11 = scalar_lea.vmem %s16_s10, 16  ;;  %s57_s12 = scalar_lea.vmem %s16_s10, 32 }
   0x4   :  { %p54_p0 = scmp.ne.s32.totalorder %s16_s10, %s53_s11  ;;  %p58_p1 = scmp.lt.s32.totalorder %s16_s10, %s16_s10 }
   0x5   :  { %p59_p2 = scmp.lt.s32.totalorder %s57_s12, %s53_s11 }
   0x7   :  { %p60_p3 = por %p59_p2, %p58_p1 }
   0x9   :  { %p61_p4 = pnand %p60_p3, %p54_p0 }
   0xb   :  { %64 = shalt.err (!%p61_p4)
}
   0xc   :  { %18 = dma.hbm_to_vmem [thread:$0]  %s115_s0, 16, %s16_s10, [#allocation3]  }
   0xd   :  { %85 = dma.done.wait [#allocation3], 16  }
   0xe   :  { %86 = vsyncadd [#allocation3], 4294967280  ;;  %s90_s15 = smov [#allocation5]   ;;  %v24_v0 = vld [vmem:[%s116_s1] sm:$0x1] }
   0xf   :  { %s34_s16 = sshll.u32 %s90_s15, 4  ;;  %v25_v1 = vld [vmem:[#allocation2] sm:$0x1]  ;;  %s35_s16 = int_to_ptr.vmem [resolvable:$true] %s34_s16 }
  0x10   :  { %v26_v2 = vmul.f32 %v25_v1, %v24_v0  ;;  %s65_s19 = scalar_lea.vmem %s35_s16, 16  ;;  %s69_s20 = scalar_lea.vmem %s35_s16, 32 }
  0x11   :  { %p66_p5 = scmp.ne.s32.totalorder %s35_s16, %s65_s19  ;;  %p70_p6 = scmp.lt.s32.totalorder %s35_s16, %s35_s16 }
  0x12   :  { %27 = vst [vmem:[#allocation5] sm:$0x1] %v26_v2  ;;  %p71_p7 = scmp.lt.s32.totalorder %s69_s20, %s65_s19 }
  0x14   :  { %p72_p8 = por %p71_p7, %p70_p6 }
  0x16   :  { %p73_p9 = pnand %p72_p8, %p66_p5 }
  0x18   :  { %76 = shalt.err (!%p73_p9)
}
  0x19   :  { %37 = dma.vmem_to_hbm [thread:$0]  %s35_s16, 16, %s117_s2, [#allocation4]  }
  0x1a   :  { %87 = dma.done.wait [#allocation4], 16  }
  0x1b   :  { %88 = vsyncadd [#allocation4], 4294967280 }
  0x1c   :  { %41 = vsyncpa [#allocation3], 1 }
  0x1d   :  { %42 = vsyncpa [#allocation4], 1 }

</bundles_post_ra>
